<compile_context>
chip_gen: v7x
topology: tpu7x:2x2x1
jax: 0.10.0
libtpu: 0.0.40
codegen_flags: <defaults>
</compile_context>

<pallas_src>
import functools
import math

import jax
import jax.numpy as jnp
from jax.experimental import pallas as pl
from jax.experimental.pallas import tpu as pltpu


# ----------------------------------------------------------------------------
# Row x col tiled linear projection kernel:  o = (x @ W^T + b) * scale
# The weight arrives pre-transposed (D_in, D_out) so the contraction is
# MXU-native (K on the lane dim of the LHS, sublane dim of the RHS).
# ----------------------------------------------------------------------------
def _linear_kernel(x_ref, wt_ref, b_ref, o_ref, *, scale):
    # x_ref: (tm, D_in), wt_ref: (D_in, tn), b_ref: (1, tn), o_ref: (tm, tn)
    acc = jax.lax.dot_general(
        x_ref[...], wt_ref[...],
        dimension_numbers=(((1,), (0,)), ((), ())),
        preferred_element_type=jnp.float32,
    )
    out = acc + b_ref[...].astype(jnp.float32)
    if scale != 1.0:
        out = out * scale                      # fused q_scaling epilogue
    o_ref[...] = out.astype(o_ref.dtype)


def pallas_linear(x, w, b, *, scale=1.0, out_dtype=None,
                  row_tile=512, col_tile=1024):
    """PyTorch nn.Linear semantics: (x @ W^T + b) * scale.

    x: (N, D_in), w: (D_out, D_in), b: (D_out,) -> (N, D_out).
    W is transposed once at the wrapper level (would be done at param-load time
    in a real model) so the in-kernel contraction never touches the XLU.
    """
    n, d_in = x.shape
    d_out = w.shape[0]
    out_dtype = out_dtype if out_dtype is not None else x.dtype
    wt = w.T                              # one-time HBM transpose -> (D_in, D_out)
    b2 = b.reshape(1, d_out)
    tm = n if n <= row_tile else row_tile
    tn = d_out if d_out <= col_tile else col_tile
    grid = (pl.cdiv(n, tm), pl.cdiv(d_out, tn))
    kernel = functools.partial(_linear_kernel, scale=scale)
    return pl.pallas_call(
        kernel,
        out_shape=jax.ShapeDtypeStruct((n, d_out), out_dtype),
        grid=grid,
        in_specs=[
            pl.BlockSpec((tm, d_in), lambda i, j: (i, 0)),   # streamed row tile
            pl.BlockSpec((d_in, tn), lambda i, j: (0, j)),   # weight col tile
            pl.BlockSpec((1, tn), lambda i, j: (0, j)),      # bias col tile
        ],
        out_specs=pl.BlockSpec((tm, tn), lambda i, j: (i, j)),
        compiler_params=pltpu.CompilerParams(
            dimension_semantics=("parallel", "parallel"),
            vmem_limit_bytes=64 * 1024 * 1024),
    )(x, wt, b2)


# ----------------------------------------------------------------------------
# Attention kernel with fused out_proj epilogue.
# Grid: (batch, Lq-tile).  K arrives pre-transposed per batch (D, Lk) so the
# per-head QK^T RHS is MXU-native.  Per-head outputs are written straight into
# a VMEM slab (no concat), normalized after the PV matmul, then projected by
# the resident W_o^T and stored lane-dense.
# ----------------------------------------------------------------------------
def _attn_kernel(q_ref, kt_ref, v_ref, owt_ref, ob_ref, o_ref, merged_ref, *,
                 num_heads):
    # q_ref : (tq, D)   bf16 (already carries q_scaling)
    # kt_ref: (D, Lk)   bf16
    # v_ref : (Lk, Dv)  bf16
    # owt_ref: (Dv, Dv) f32  (out_proj weight, pre-transposed)
    # ob_ref: (1, Dv)   f32
    # o_ref : (tq, Dv)
    # merged_ref: VMEM scratch (tq, Dv) f32
    q = q_ref[...]
    kt = kt_ref[...]
    v = v_ref[...]
    d = q.shape[-1]
    dv = v.shape[-1]
    dh = d // num_heads
    dhv = dv // num_heads

    for h in range(num_heads):                         # static head loop
        qh = q[:, h * dh:(h + 1) * dh]                 # (tq, dh)
        kth = kt[h * dh:(h + 1) * dh, :]               # (dh, Lk) sublane slice
        vh = v[:, h * dhv:(h + 1) * dhv]               # (Lk, dhv)
        s = jax.lax.dot_general(
            qh, kth,
            dimension_numbers=(((1,), (0,)), ((), ())),   # MXU-native QK^T
            preferred_element_type=jnp.float32,
        )                                               # (tq, Lk) f32
        # NOTE: the module's scalar `offset` is a softmax no-op; dropped here.
        s = s - jnp.max(s, axis=-1, keepdims=True)
        p = jnp.exp(s)
        l = jnp.sum(p, axis=-1, keepdims=True)          # (tq, 1)
        oh = jax.lax.dot_general(
            p.astype(v.dtype), vh,
            dimension_numbers=(((1,), (0,)), ((), ())),
            preferred_element_type=jnp.float32,
        )                                               # (tq, dhv)
        # Normalize AFTER PV: Lq*Dhv multiplies instead of Lq*Lk; EUP reciprocal.
        oh = oh * pl.reciprocal(l, approx=True)
        # attn_dropout is identity in eval mode.
        merged_ref[:, h * dhv:(h + 1) * dhv] = oh       # direct per-head store

    # Fused out_proj: one matmul on the merged slab, then a single lane-dense store.
    out = jax.lax.dot_general(
        merged_ref[...], owt_ref[...],
        dimension_numbers=(((1,), (0,)), ((), ())),
        preferred_element_type=jnp.float32,
    ) + ob_ref[...].astype(jnp.float32)
    o_ref[...] = out.astype(o_ref.dtype)


def pallas_attention_out(qp, kt, vp, o_w, o_b, *, num_heads, out_dtype,
                         q_tile=256):
    """qp: (B,Lq,D) bf16, kt: (B,D,Lk) bf16, vp: (B,Lk,Dv) bf16 -> (B,Lq,Dv)."""
    B, Lq, D = qp.shape
    Lk = kt.shape[2]
    Dv = vp.shape[2]
    owt = o_w.T                       # (Dv_in, Dv_out), one-time transpose
    ob2 = o_b.reshape(1, Dv)
    tq = Lq if Lq <= q_tile else q_tile
    grid = (B, pl.cdiv(Lq, tq))
    kernel = functools.partial(_attn_kernel, num_heads=num_heads)
    return pl.pallas_call(
        kernel,
        out_shape=jax.ShapeDtypeStruct((B, Lq, Dv), out_dtype),
        grid=grid,
        in_specs=[
            pl.BlockSpec((None, tq, D), lambda b, i: (b, i, 0)),   # q tile
            pl.BlockSpec((None, D, Lk), lambda b, i: (b, 0, 0)),   # K^T, resident per batch
            pl.BlockSpec((None, Lk, Dv), lambda b, i: (b, 0, 0)),  # V, resident per batch
            pl.BlockSpec((Dv, Dv), lambda b, i: (0, 0)),           # W_o^T, resident
            pl.BlockSpec((1, Dv), lambda b, i: (0, 0)),            # b_o, resident
        ],
        out_specs=pl.BlockSpec((None, tq, Dv), lambda b, i: (b, i, 0)),
        scratch_shapes=[pltpu.VMEM((tq, Dv), jnp.float32)],
        compiler_params=pltpu.CompilerParams(
            dimension_semantics=("parallel", "parallel"),
            vmem_limit_bytes=64 * 1024 * 1024),
    )(qp, kt, vp, owt, ob2)


# ----------------------------------------------------------------------------
# Full QKVAttention forward (eval mode)
# ----------------------------------------------------------------------------
def qkv_attention_forward(q, k, v, params, *, num_heads, offset=0.0):
    orig_shape = q.shape
    qk_dim = q.shape[-1]
    v_dim = v.shape[-1]
    B = q.shape[0]
    assert qk_dim % num_heads == 0, (qk_dim, num_heads)
    assert v_dim % num_heads == 0, (v_dim, num_heads)
    if getattr(offset, "ndim", 0) > 0:
        # TODO(synk): tensor-valued offset (additive attention bias).
        raise NotImplementedError("only scalar offset supported")

    q2 = q.reshape(B, -1, qk_dim)
    k2 = k.reshape(B, -1, qk_dim)
    v2 = v.reshape(B, -1, v_dim)
    Lq, Lk = q2.shape[1], k2.shape[1]

    scale = float(qk_dim // num_heads) ** (-0.5)

    # in_proj; q_scaling fused into the q projection; bf16 outputs feed the MXU
    # natively and halve the HBM bytes of the (B, L, D) intermediates.
    qp = pallas_linear(q2.reshape(-1, qk_dim), params["q_w"], params["q_b"],
                       scale=scale, out_dtype=jnp.bfloat16
                       ).reshape(B, Lq, qk_dim)
    kp = pallas_linear(k2.reshape(-1, qk_dim), params["k_w"], params["k_b"],
                       out_dtype=jnp.bfloat16).reshape(B, Lk, qk_dim)
    vp = pallas_linear(v2.reshape(-1, v_dim), params["v_w"], params["v_b"],
                       out_dtype=jnp.bfloat16).reshape(B, Lk, v_dim)

    # One cheap HBM transpose of K (bf16) so the in-kernel QK^T RHS is MXU-native.
    kt = jnp.swapaxes(kp, 1, 2)                                   # (B, D, Lk)

    # Attention + fused out_proj.  Scalar `offset` is a softmax no-op (ignored).
    out = pallas_attention_out(qp, kt, vp, params["o_w"], params["o_b"],
                               num_heads=num_heads, out_dtype=q.dtype)

    # seq_dropout (Dropout2d) is identity in eval mode.
    return out.reshape(orig_shape)


# ----------------------------------------------------------------------------
# Deterministic parameter init + smoke test
# ----------------------------------------------------------------------------
def init_params(key, qk_dim, v_dim):
    ks = jax.random.split(key, 8)

    def lin(kw, kb, d_out, d_in):
        bound = 1.0 / math.sqrt(d_in)
        w = jax.random.uniform(kw, (d_out, d_in), jnp.float32, -bound, bound)
        b = jax.random.uniform(kb, (d_out,), jnp.float32, -bound, bound)
        return w, b

    q_w, q_b = lin(ks[0], ks[1], qk_dim, qk_dim)
    k_w, k_b = lin(ks[2], ks[3], qk_dim, qk_dim)
    v_w, v_b = lin(ks[4], ks[5], v_dim, v_dim)
    o_w, o_b = lin(ks[6], ks[7], v_dim, v_dim)
    return dict(q_w=q_w, q_b=q_b, k_w=k_w, k_b=k_b,
                v_w=v_w, v_b=v_b, o_w=o_w, o_b=o_b)


def _split_heads_ref(x, num_heads):
    B, L, D = x.shape
    return x.reshape(B, L, num_heads, D // num_heads).transpose(0, 2, 1, 3)


def _merge_heads_ref(x):
    B, H, L, Dh = x.shape
    return x.transpose(0, 2, 1, 3).reshape(B, L, H * Dh)


if __name__ == "__main__":
    # Small, module-consistent shapes: qk_dim=v_dim=32, num_heads=4,
    # q/k/v of shape (B=2, 2, 4, 32) -> flattened seq length L=8.
    qk_dim, v_dim, num_heads = 32, 32, 4
    key = jax.random.PRNGKey(0)
    kq, kk, kv, kparams = jax.random.split(key, 4)

    q = jax.random.normal(kq, (2, 2, 4, qk_dim), jnp.float32)
    k = jax.random.normal(kk, (2, 2, 4, qk_dim), jnp.float32)
    v = jax.random.normal(kv, (2, 2, 4, v_dim), jnp.float32)
    params = init_params(kparams, qk_dim, v_dim)

    out = qkv_attention_forward(q, k, v, params, num_heads=num_heads, offset=0.0)
    jax.block_until_ready(out)
    assert out.shape == q.shape, out.shape

    # Pure-JAX reference of the same math (same bf16 cast points; exact softmax).
    def ref_forward(q, k, v):
        hp = jax.lax.Precision.HIGHEST
        B = q.shape[0]
        scale = float(qk_dim // num_heads) ** (-0.5)
        q2 = q.reshape(B, -1, qk_dim)
        k2 = k.reshape(B, -1, qk_dim)
        v2 = v.reshape(B, -1, v_dim)
        qp = (jnp.einsum("bld,ed->ble", q2, params["q_w"], precision=hp)
              + params["q_b"]) * scale
        kp2 = jnp.einsum("bld,ed->ble", k2, params["k_w"], precision=hp) + params["k_b"]
        vp2 = jnp.einsum("bld,ed->ble", v2, params["v_w"], precision=hp) + params["v_b"]
        qp, kp2, vp2 = (x.astype(jnp.bfloat16) for x in (qp, kp2, vp2))
        qh, kh, vh = (_split_heads_ref(x, num_heads) for x in (qp, kp2, vp2))
        s = jnp.einsum("bhqd,bhkd->bhqk", qh, kh, precision=hp,
                       preferred_element_type=jnp.float32)
        p = jax.nn.softmax(s, axis=-1)
        o = jnp.einsum("bhqk,bhkd->bhqd", p.astype(jnp.bfloat16), vh, precision=hp,
                       preferred_element_type=jnp.float32)
        o = _merge_heads_ref(o)
        o = jnp.einsum("blv,ev->ble", o, params["o_w"], precision=hp) + params["o_b"]
        return o.reshape(q.shape).astype(q.dtype)

    ref = ref_forward(q, k, v)
    err = float(jnp.max(jnp.abs(out - ref)))
    # Tolerance covers the EUP approximate reciprocal and the kernel's
    # normalize-after-PV ordering applied to bf16-rounded probabilities.
    assert jnp.allclose(out, ref, atol=2e-2, rtol=2e-2), err

    print("KERNEL_OK")
</pallas_src>

<mosaic_0001>
module attributes {stable_mosaic.version = 11 : i64} {
  func.func @_linear_kernel(%arg0: i32, %arg1: i32, %arg2: memref<16x32xf32, #tpu.memory_space<vmem>>, %arg3: memref<32x32xf32, #tpu.memory_space<vmem>>, %arg4: memref<1x32xf32, #tpu.memory_space<vmem>>, %arg5: memref<16x32xbf16, #tpu.memory_space<vmem>>) attributes {dimension_semantics = [#tpu.dimension_semantics<parallel>, #tpu.dimension_semantics<parallel>], iteration_bounds = array<i64: 1, 1>, scalar_prefetch = 0 : i64, scratch_operands = 0 : i64, tpu.core_type = #tpu.core_type<tc>, window_params = [{transform_indices = @transform_0, window_bounds = array<i64: 16, 32>}, {transform_indices = @transform_1, window_bounds = array<i64: 32, 32>}, {transform_indices = @transform_2, window_bounds = array<i64: 1, 32>}, {transform_indices = @transform_3, window_bounds = array<i64: 16, 32>}]} {
    %c0 = arith.constant 0 : index
    %c0_0 = arith.constant 0 : index
    %0 = vector.load %arg2[%c0, %c0_0] : memref<16x32xf32, #tpu.memory_space<vmem>>, vector<16x32xf32>
    %c0_1 = arith.constant 0 : index
    %c0_2 = arith.constant 0 : index
    %1 = vector.load %arg3[%c0_1, %c0_2] : memref<32x32xf32, #tpu.memory_space<vmem>>, vector<32x32xf32>
    %cst = arith.constant dense<0.000000e+00> : vector<16x32xf32>
    %2 = tpu.matmul %0, %1, %cst {dimension_numbers = #tpu.dot_dimension_numbers<[1], [0], [0], [1], [0, 0, 1, 1], [], []>} : vector<16x32xf32>, vector<32x32xf32>, vector<16x32xf32> -> vector<16x32xf32>
    %c0_3 = arith.constant 0 : index
    %c0_4 = arith.constant 0 : index
    %3 = vector.load %arg4[%c0_3, %c0_4] : memref<1x32xf32, #tpu.memory_space<vmem>>, vector<1x32xf32>
    %4 = vector.broadcast %3 : vector<1x32xf32> to vector<16x32xf32>
    %5 = arith.addf %2, %4 : vector<16x32xf32>
    %cst_5 = arith.constant 0.353553385 : f32
    %6 = vector.broadcast %cst_5 : f32 to vector<16x32xf32>
    %7 = arith.mulf %5, %6 : vector<16x32xf32>
    %8 = arith.truncf %7 : vector<16x32xf32> to vector<16x32xbf16>
    %c0_6 = arith.constant 0 : index
    %c0_7 = arith.constant 0 : index
    %9 = vector.load %arg5[%c0_6, %c0_7] : memref<16x32xbf16, #tpu.memory_space<vmem>>, vector<16x32xbf16>
    tpu.vector_store %arg5[%c0_6, %c0_7], %8 {strides = array<i32>} : memref<16x32xbf16, #tpu.memory_space<vmem>>, vector<16x32xbf16>,
    return
  }
  func.func @transform_0(%arg0: i32, %arg1: i32) -> (i32, i32) {
    %c0_i32 = arith.constant 0 : i32
    %c0_i32_0 = arith.constant 0 : i32
    return %arg0, %c0_i32 : i32, i32
  }
  func.func @transform_1(%arg0: i32, %arg1: i32) -> (i32, i32) {
    %c0_i32 = arith.constant 0 : i32
    %c0_i32_0 = arith.constant 0 : i32
    return %c0_i32, %arg1 : i32, i32
  }
  func.func @transform_2(%arg0: i32, %arg1: i32) -> (i32, i32) {
    %c0_i32 = arith.constant 0 : i32
    %c0_i32_0 = arith.constant 0 : i32
    return %c0_i32, %arg1 : i32, i32
  }
  func.func @transform_3(%arg0: i32, %arg1: i32) -> (i32, i32) {
    %c0_i32 = arith.constant 0 : i32
    return %arg0, %arg1 : i32, i32
  }
}

</mosaic_0001>

<bundles_post_ra>
// kernel: tpu_custom_call.1
= control target key start
LH: loop header
LB: loop body
LE: loop exit
PB: predicated region body
PF: predicated region fallthrough
CT: control target
= control target key end

     0   :  { %8 = vsyncpa [#allocation3], 0  ;;  %s397_s0 = inlined_call_operand.hbm [shape: f32[16,32], index: 0, kind: input, shape index: {}]   ;;  %s398_s1 = inlined_call_operand.hbm [shape: f32[32,32], index: 1, kind: input, shape index: {}]   ;;  %s399_s2 = inlined_call_operand.hbm [shape: f32[1,32], index: 2, kind: input, shape index: {}]   ;;  %s400_s3 = inlined_call_operand.hbm [shape: bf16[16,32], index: 3, kind: output, shape index: {}]  }
   0x1   :  { %9 = vsyncpa [#allocation6], 0 }
   0x2   :  { %10 = vsyncpa [#allocation4], 0  ;;  %s314_s12 = smov [#allocation5]   ;;  %s315_s14 = smov [#allocation2]  }
   0x3   :  { %s28_s13 = sshll.u32 %s314_s12, 4  ;;  %s16_s15 = sshll.u32 %s315_s14, 4  ;;  %s29_s13 = int_to_ptr.vmem [resolvable:$true] %s28_s13  ;;  %s342_s15 = int_to_ptr.vmem [resolvable:$true] %s16_s15 }
   0x4   :  { %s220_s18 = scalar_lea.hbm %s398_s1, 512 }
   0x5   :  { %p221_p0 = scmp.ne.s32.totalorder %s398_s1, %s220_s18  ;;  %p224_p1 = scmp.lt.u32.totalorder %s220_s18, %s398_s1 }
   0x7   :  { %p226_p2 = pnand %p224_p1, %p221_p0 }
   0x9   :  { %229 = shalt.err (!%p226_p2)
}
   0xa   :  { %s230_s23 = scalar_lea.vmem %s29_s13, 512  ;;  %p235_p4 = scmp.lt.s32.totalorder %s29_s13, %s29_s13 }
   0xb   :  { %p231_p3 = scmp.ne.s32.totalorder %s29_s13, %s230_s23  ;;  %p236_p5 = scmp.lt.s32.totalorder %s230_s23, %s230_s23 }
   0xd   :  { %p237_p6 = por %p236_p5, %p235_p4 }
   0xf   :  { %p238_p7 = pnand %p237_p6, %p231_p3 }
  0x11   :  { %241 = shalt.err (!%p238_p7)
}
  0x12   :  { %s316_s24 = smov 128   ;;  %s317_s25 = smov 8  }
  0x13   :  { %34 = dma.hbm_to_vmem [thread:$0]  %s398_s1, 512, %s29_s13, [#allocation6], %s316_s24, %s316_s24, %s317_s25  }
  0x14   :  { %s242_s30 = scalar_lea.hbm %s397_s0, 256 }
  0x15   :  { %p243_p8 = scmp.ne.s32.totalorder %s397_s0, %s242_s30  ;;  %p246_p9 = scmp.lt.u32.totalorder %s242_s30, %s397_s0 }
  0x17   :  { %p248_p10 = pnand %p246_p9, %p243_p8 }
  0x19   :  { %251 = shalt.err (!%p248_p10)
}
  0x1a   :  { %s252_s8 = scalar_lea.vmem %s342_s15, 256  ;;  %p257_p12 = scmp.lt.s32.totalorder %s342_s15, %s342_s15 }
  0x1b   :  { %p253_p11 = scmp.ne.s32.totalorder %s342_s15, %s252_s8  ;;  %p258_p13 = scmp.lt.s32.totalorder %s252_s8, %s252_s8 }
  0x1d   :  { %p259_p0 = por %p258_p13, %p257_p12 }
  0x1f   :  { %p260_p1 = pnand %p259_p0, %p253_p11 }
  0x21   :  { %263 = shalt.err (!%p260_p1)
}
  0x22   :  { %22 = dma.hbm_to_vmem [thread:$0]  %s397_s0, 256, %s342_s15, [#allocation3], %s316_s24, %s316_s24, %s317_s25  }
  0x23   :  { %s318_s10 = smov [#allocation7]   ;;  %s264_s14 = scalar_lea.hbm %s399_s2, 16 }
  0x24   :  { %s41_s11 = sshll.u32 %s318_s10, 4  ;;  %p265_p2 = scmp.ne.s32.totalorder %s399_s2, %s264_s14  ;;  %s42_s11 = int_to_ptr.vmem [resolvable:$true] %s41_s11 }
  0x25   :  { %p268_p3 = scmp.lt.u32.totalorder %s264_s14, %s399_s2 }
  0x27   :  { %p270_p4 = pnand %p268_p3, %p265_p2 }
  0x29   :  { %273 = shalt.err (!%p270_p4)
}
  0x2a   :  { %s274_s20 = scalar_lea.vmem %s42_s11, 16  ;;  %s278_s0 = scalar_lea.vmem %s42_s11, 32 }
  0x2b   :  { %p275_p5 = scmp.ne.s32.totalorder %s42_s11, %s274_s20  ;;  %p279_p6 = scmp.lt.s32.totalorder %s42_s11, %s42_s11 }
  0x2c   :  { %p280_p7 = scmp.lt.s32.totalorder %s278_s0, %s274_s20 }
  0x2e   :  { %p281_p8 = por %p280_p7, %p279_p6 }
  0x30   :  { %p282_p9 = pnand %p281_p8, %p275_p5 }
  0x32   :  { %285 = shalt.err (!%p282_p9)
}
  0x33   :  { %44 = dma.hbm_to_vmem [thread:$0]  %s399_s2, 16, %s42_s11, [#allocation6]  }
  0x34   :  { %308 = dma.done.wait [#allocation3], 256  }
  0x35   :  { %309 = vsyncadd [#allocation3], 4294967040 }
  0x36   :  { %310 = dma.done.wait [#allocation6], 528  }
  0x37   :  { %311 = vsyncadd [#allocation6], 4294966768  ;;  %vm67_vm0 = vcmask 261120   ;;  %v56_v0 = vld [vmem:[#allocation5] sm:$0xff]  ;;  %v57_v1 = vld [vmem:[#allocation5 + $0x8] sm:$0xff]  ;;  %s319_s2 = smov [#allocation8]  }
  0x38   :  { %v58_v2 = vld [vmem:[#allocation5 + $0x10] sm:$0xff]  ;;  %v204_v3 = vpack.c.bf16 %v57_v1, %v56_v0  ;;  %v59_v4 = vld [vmem:[#allocation5 + $0x18] sm:$0xff]  ;;  %v180_v8 = vld [vmem:[#allocation7] ss:$0 sm:$0xff]  ;;  %s167_s22 = sshll.u32 %s319_s2, 4  ;;  %vm159_vm1 = vcmask 257024   ;;  %s168_s22 = int_to_ptr.vmem [resolvable:$true] %s167_s22 }
  0x39   :  { %v54_v5 = vld [vmem:[#allocation2] sm:$0xff]  ;;  %v208_v6 = vpack.c.bf16 %v59_v4, %v58_v2  ;;  %v55_v7 = vld [vmem:[#allocation2 + $0x8] sm:$0xff]  ;;  %s286_s23 = scalar_lea.vmem %s168_s22, 128  ;;  %p291_p11 = scmp.lt.s32.totalorder %s168_s22, %s168_s22 }
  0x3a   :  { %201 = vmatprep.mubr.msk.f32.mxu0 %vm67_vm0, %v54_v5  ;;  %205 = vmatprep.subr.bf16.mxu0 %v204_v3  ;;  %p287_p10 = scmp.ne.s32.totalorder %s168_s22, %s286_s23  ;;  %p292_p12 = scmp.lt.s32.totalorder %s286_s23, %s286_s23 }
  0x3b   :  { %207 = vmatpush3.bf16.msra.mxu0 %v204_v3 }
  0x3c   :  { %209 = vmatprep.subr.bf16.mxu0 %v208_v6  ;;  %p293_p13 = por %p292_p12, %p291_p11 }
  0x3e   :  { %p294_p0 = pnand %p293_p13, %p287_p10 }
  0x3f   :  { %211 = vmatpush3.bf16.msra.mxu0 %v208_v6 }
  0x42   :  { %202 = vmatmul.mubr.msk.f32.vlgmr.msra.gmra.mrb[0].mxu0 %vm67_vm0, %v55_v7 }
 0x115   :  { %v203_v9 = vpop.f32.mrb[0].mxu0 }
 0x116   :  { %v146_v10 = vadd.f32 %v203_v9, %v180_v8  ;;  %v140_v11 = vpop.f32.mrb[1].mxu0 }
 0x117   :  { %v141_v12 = vadd.f32 %v180_v8, %v140_v11 }
 0x118   :  { %v150_v13 = vmul.f32 0.35355338, %v146_v10 }
 0x119   :  { %v149_v14 = vmul.f32 0.35355338, %v141_v12 }
 0x11a   :  { %v186_v15 = vpack.c.bf16 %v150_v13, %v150_v13 }
 0x11b   :  { %v185_v16 = vpack.c.bf16 %v149_v14, %v149_v14 }
 0x11c   :  { %161 = vst.msk [vmem:[#allocation8 + $0x4] sm:$0xf] %vm159_vm1, %v186_v15 }
 0x11d   :  { %160 = vst.msk [vmem:[#allocation8] sm:$0xf] %vm159_vm1, %v185_v16 }
 0x11e   :  { %297 = shalt.err (!%p294_p0)
}
 0x11f   :  { %s298_s26 = scalar_lea.hbm %s400_s3, 128 }
 0x120   :  { %p299_p1 = scmp.ne.s32.totalorder %s400_s3, %s298_s26  ;;  %p302_p2 = scmp.lt.u32.totalorder %s298_s26, %s400_s3 }
 0x122   :  { %p304_p3 = pnand %p302_p2, %p299_p1 }
 0x124   :  { %307 = shalt.err (!%p304_p3)
}
 0x125   :  { %s320_s4 = smov 64   ;;  %s321_s5 = smov 4  }
 0x126   :  { %173 = dma.vmem_to_hbm [thread:$0]  %s168_s22, 128, %s400_s3, [#allocation4], %s320_s4, %s320_s4, %s321_s5  }
 0x127   :  { %312 = dma.done.wait [#allocation4], 128  }
 0x128   :  { %313 = vsyncadd [#allocation4], 4294967168 }
 0x129   :  { %177 = vsyncpa [#allocation3], 1 }
 0x12a   :  { %178 = vsyncpa [#allocation6], 1 }
 0x12b   :  { %179 = vsyncpa [#allocation4], 1 }

</bundles_post_ra>
